<compile_context>
chip_gen: v7x
topology: tpu7x:2x2x1
jax: 0.10.0
libtpu: 0.0.40
codegen_flags: <defaults>
</compile_context>

<pallas_src>
import functools
from typing import NamedTuple

import jax
import jax.numpy as jnp
from jax import lax
from jax.experimental import pallas as pl
from jax.experimental.pallas import tpu as pltpu


# ----------------------------------------------------------------------------
# Per-generation tuning.
# ----------------------------------------------------------------------------
class _Budget(NamedTuple):
    vmem_limit: int     # vmem_limit_bytes handed to Mosaic
    block_bytes: int    # per-input, per-pipeline-buffer VMEM budget
    tk_cap: int         # cap on the HW-contraction tile of the style kernel


def _detect_budget() -> _Budget:
    vmem_cap = 0
    try:
        info = pltpu.get_tpu_info()
        vmem_cap = int(getattr(info, "vmem_capacity_bytes", 0) or 0)
    except Exception:
        vmem_cap = 0
    if vmem_cap >= 96 * 2**20:
        # v5e / v6e: 128 MiB VMEM -> bigger tiles, fewer grid steps, less RMW.
        return _Budget(vmem_limit=64 * 2**20, block_bytes=6 * 2**20, tk_cap=4096)
    # v7x (64 MiB VMEM) or unknown chip: conservative settings.
    return _Budget(vmem_limit=32 * 2**20, block_bytes=2 * 2**20, tk_cap=2048)


_CFG_CACHE = None


def _cfg() -> _Budget:
    global _CFG_CACHE
    if _CFG_CACHE is None:
        _CFG_CACHE = _detect_budget()
    return _CFG_CACHE


# The MXU is bf16-native on all three generations; accumulation stays f32.
_GRAM_MATMUL_DTYPE = jnp.bfloat16


# ----------------------------------------------------------------------------
# Kernel 1: tiled mean-squared-error.
# Grid = (P, inner): P is a "parallel" split of the row tiles (v7x megacore),
# inner walks each slice's tiles ("arbitrary").  Per-step work is pure VPU
# (acc += d*d into a full-tile f32 scratch); one cross-lane reduce + output
# write per slice at the last inner step.  Ragged / duplicated edge tiles are
# masked only inside a pl.when branch.
# ----------------------------------------------------------------------------
def _mse_kernel(a_ref, b_ref, o_ref, acc_ref, *, tile_r, total_rows, num_tiles,
                inner, need_mask):
    p = pl.program_id(0)
    i = pl.program_id(1)

    @pl.when(i == 0)
    def _():
        acc_ref[...] = jnp.zeros_like(acc_ref)

    d = a_ref[...].astype(jnp.float32) - b_ref[...].astype(jnp.float32)

    if need_mask:
        t = p * inner + i                      # linear tile id (before clamping)
        is_edge = t >= (num_tiles - 1)

        @pl.when(is_edge)
        def _():
            # Index map clamps out-of-range tile ids to the last real tile; rows
            # past total_rows and duplicate reads contribute exactly zero.
            row0 = jnp.minimum(t, num_tiles - 1) * tile_r
            row_ids = row0 + lax.broadcasted_iota(jnp.int32, d.shape, 0)
            valid = (row_ids < total_rows) & (t < num_tiles)
            dm = jnp.where(valid, d, 0.0)
            acc_ref[...] += dm * dm

        @pl.when(jnp.logical_not(is_edge))
        def _():
            acc_ref[...] += d * d
    else:
        acc_ref[...] += d * d

    @pl.when(i == inner - 1)
    def _():
        o_ref[...] = jnp.full(o_ref.shape, jnp.sum(acc_ref[...]), jnp.float32)


def _mse_flatten(a, b):
    """Reshape to a lane-dense (rows, lanes) view; zero-pad if n % 128 != 0."""
    n = a.size
    for cand in (512, 256, 128):
        if n % cand == 0:
            return a.reshape(-1, cand), b.reshape(-1, cand), n
    pad = (-n) % 128
    af = jnp.pad(a.reshape(-1), (0, pad))
    bf = jnp.pad(b.reshape(-1), (0, pad))
    return af.reshape(-1, 128), bf.reshape(-1, 128), n


def mse(a, b):
    """F.mse_loss(a, b) with default 'mean' reduction (tiled Pallas reduction)."""
    assert a.shape == b.shape
    cfg = _cfg()
    a2, b2, n = _mse_flatten(a, b)
    rows, lanes = a2.shape

    itemsize = jnp.dtype(a2.dtype).itemsize
    max_rows = max(8, cfg.block_bytes // (lanes * itemsize))
    if rows <= max_rows:
        tile_r = rows                       # full-dim block is always legal
    else:
        tile_r = max(8, (max_rows // 8) * 8)
    num_tiles = pl.cdiv(rows, tile_r)

    # Leading "parallel" axis -> v7x's second TensorCore shares the stream.
    num_parallel = 2 if num_tiles >= 2 else 1
    inner = pl.cdiv(num_tiles, num_parallel)
    need_mask = (rows % tile_r != 0) or (num_parallel * inner != num_tiles)

    in_map = lambda p, i: (jnp.minimum(p * inner + i, num_tiles - 1), 0)

    out = pl.pallas_call(
        functools.partial(
            _mse_kernel,
            tile_r=tile_r,
            total_rows=rows,
            num_tiles=num_tiles,
            inner=inner,
            need_mask=need_mask,
        ),
        grid=(num_parallel, inner),
        in_specs=[
            pl.BlockSpec((tile_r, lanes), in_map),
            pl.BlockSpec((tile_r, lanes), in_map),
        ],
        out_specs=pl.BlockSpec((1, 8, 128), lambda p, i: (p, 0, 0)),
        out_shape=jax.ShapeDtypeStruct((num_parallel, 8, 128), jnp.float32),
        scratch_shapes=[pltpu.VMEM((tile_r, lanes), jnp.float32)],
        compiler_params=pltpu.CompilerParams(
            dimension_semantics=("parallel", "arbitrary"),
            vmem_limit_bytes=cfg.vmem_limit,
        ),
    )(a2, b2)
    return jnp.sum(out[:, 0, 0]) * jnp.float32(1.0 / n)


# ----------------------------------------------------------------------------
# Kernel 2: fused style term for one layer.
# For features F_out[b], F_sty[b] of shape (C, HW):
#   D[b]  = (F_out[b] @ F_out[b]^T - F_sty[b] @ F_sty[b]^T) / (C*H*W)
#   sse_b = sum(D[b]^2)
# Grid = (B "parallel", HW//TK "arbitrary"); one (C,C) f32 difference-Gram
# accumulator in VMEM; Gram matrices never touch HBM; per-batch partial SSE
# goes out (summed in the wrapper).
# ----------------------------------------------------------------------------
def _style_layer_kernel(of_ref, sf_ref, o_ref, g_acc, *, inv_denom):
    k = pl.program_id(1)

    @pl.when(k == 0)
    def _():
        g_acc[...] = jnp.zeros_like(g_acc)

    # (C, TK) tiles, cast to bf16 for the MXU (f32 accumulation).
    fo = of_ref[0].astype(_GRAM_MATMUL_DTYPE)
    fs = sf_ref[0].astype(_GRAM_MATMUL_DTYPE)
    # Contract the last axis of both operands: F @ F^T without materializing a
    # transpose (same "NT" form as q @ k^T in flash attention; no XLU vxpose).
    dims = (((1,), (1,)), ((), ()))
    # Single difference-Gram accumulator (numerically equivalent to subtracting
    # two separately-accumulated Grams).
    g_acc[...] += (
        lax.dot_general(fo, fo, dims, preferred_element_type=jnp.float32)
        - lax.dot_general(fs, fs, dims, preferred_element_type=jnp.float32)
    )

    @pl.when(k == pl.num_programs(1) - 1)
    def _():
        g = g_acc[...] * jnp.float32(inv_denom)     # G_out[b] - G_sty[b]
        o_ref[...] = jnp.full(o_ref.shape, jnp.sum(g * g), jnp.float32)


def _choose_tk(c, hw, itemsize, cfg):
    """Largest multiple of 128 dividing HW, capped by VMEM budget and tk_cap."""
    if hw % 128 != 0:
        return hw  # full-dim block is always legal
    vmem_tk = max(128, (cfg.block_bytes // max(1, c * itemsize)) // 128 * 128)
    tk = min(hw, cfg.tk_cap, vmem_tk)
    tk = max(128, (tk // 128) * 128)
    while hw % tk != 0:
        tk -= 128
    return tk


def style_layer_sse(out_f, sty_f):
    """Sum over batch of sum((Gram(out_f) - Gram(sty_f))^2), fused in one kernel."""
    assert out_f.shape == sty_f.shape
    cfg = _cfg()
    b, c, h, w = out_f.shape
    hw = h * w
    fo = out_f.reshape(b, c, hw)
    fs = sty_f.reshape(b, c, hw)

    tk = _choose_tk(c, hw, jnp.dtype(out_f.dtype).itemsize, cfg)
    kt = hw // tk
    inv_denom = 1.0 / float(c * h * w)

    out = pl.pallas_call(
        functools.partial(_style_layer_kernel, inv_denom=inv_denom),
        grid=(b, kt),
        in_specs=[
            pl.BlockSpec((1, c, tk), lambda i, k: (i, 0, k)),
            pl.BlockSpec((1, c, tk), lambda i, k: (i, 0, k)),
        ],
        out_specs=pl.BlockSpec((1, 8, 128), lambda i, k: (i, 0, 0)),
        out_shape=jax.ShapeDtypeStruct((b, 8, 128), jnp.float32),
        scratch_shapes=[pltpu.VMEM((c, c), jnp.float32)],
        compiler_params=pltpu.CompilerParams(
            # Batch axis "parallel" (per-batch partials -> megacore-friendly on
            # v7x); HW contraction "arbitrary" (resident accumulator).
            dimension_semantics=("parallel", "arbitrary"),
            vmem_limit_bytes=cfg.vmem_limit,
        ),
    )(fo, fs)
    return jnp.sum(out[:, 0, 0])


# ----------------------------------------------------------------------------
# StyleLoss.forward
# ----------------------------------------------------------------------------
def style_loss_forward(output_features, content_features, style_features):
    """
    Args:
        output_features / content_features / style_features:
            lists of feature maps, each [B, C, H, W].
    Returns:
        (content_loss, style_loss) as float32 scalars.
    """
    # Content loss: mean over layers of per-layer MSE (each MSE is a tiled kernel).
    content_loss = jnp.float32(0.0)
    for out_f, cont_f in zip(output_features, content_features):
        content_loss = content_loss + mse(out_f, cont_f)
    content_loss = content_loss / len(output_features)

    # Style loss: MSE between Gram matrices of the last two layers, averaged.
    # Gram + MSE are fused per layer; only per-batch scalars leave the kernel.
    # TODO(synk): optionally fuse the content-MSE of these layers into the same
    # kernel so out_f is streamed from HBM only once.
    style_loss = jnp.float32(0.0)
    for idx in (-2, -1):
        out_f = output_features[idx]
        sty_f = style_features[idx]
        b, c, _, _ = out_f.shape
        sse = style_layer_sse(out_f, sty_f)
        style_loss = style_loss + sse / jnp.float32(b * c * c)
    style_loss = style_loss / 2

    return content_loss, style_loss


if __name__ == "__main__":
    # Small, deterministic synthetic inputs: 3 feature layers, each [B,C,H,W].
    key = jax.random.PRNGKey(0)
    B, C, H, W = 2, 4, 16, 16
    n_layers = 3

    keys = jax.random.split(key, 3 * n_layers + 4)
    output_features = [
        jax.random.normal(keys[i], (B, C, H, W), dtype=jnp.float32)
        for i in range(n_layers)
    ]
    content_features = [
        jax.random.normal(keys[n_layers + i], (B, C, H, W), dtype=jnp.float32)
        for i in range(n_layers)
    ]
    style_features = [
        jax.random.normal(keys[2 * n_layers + i], (B, C, H, W), dtype=jnp.float32)
        for i in range(n_layers)
    ]

    content_loss, style_loss = style_loss_forward(
        output_features, content_features, style_features
    )
    jax.block_until_ready((content_loss, style_loss))

    # ---- References (pure JAX, non-Pallas) ----
    def _ref_gram(x, dtype):
        b, c, h, w = x.shape
        f = x.reshape(b, c, h * w).astype(dtype)
        g = jnp.einsum("bij,bkj->bik", f, f, preferred_element_type=jnp.float32)
        return g / (c * h * w)

    ref_content = sum(
        jnp.mean((o - c_) ** 2) for o, c_ in zip(output_features, content_features)
    ) / n_layers
    ref_style_bf16 = sum(
        jnp.mean((_ref_gram(output_features[i], jnp.bfloat16)
                  - _ref_gram(style_features[i], jnp.bfloat16)) ** 2)
        for i in (-2, -1)
    ) / 2
    ref_style_f32 = sum(
        jnp.mean((_ref_gram(output_features[i], jnp.float32)
                  - _ref_gram(style_features[i], jnp.float32)) ** 2)
        for i in (-2, -1)
    ) / 2

    assert jnp.allclose(content_loss, ref_content, rtol=1e-5, atol=1e-6)
    # Kernel uses bf16 MXU operands -> compare tightly against a bf16-consistent
    # reference and loosely against the full-f32 reference (semantic sanity).
    assert jnp.allclose(style_loss, ref_style_bf16, rtol=2e-3, atol=1e-6)
    assert jnp.allclose(style_loss, ref_style_f32, rtol=1e-1, atol=1e-3)

    # Extra MSE coverage: multi-tile + ragged tail + parallel split ...
    xa = jax.random.normal(keys[-4], (6400, 512), dtype=jnp.float32)
    xb = jax.random.normal(keys[-3], (6400, 512), dtype=jnp.float32)
    assert jnp.allclose(mse(xa, xb), jnp.mean((xa - xb) ** 2), rtol=1e-4, atol=1e-7)
    # ... and a non-128-divisible shape that takes the zero-padding path.
    ya = jax.random.normal(keys[-2], (3, 5, 7), dtype=jnp.float32)
    yb = jax.random.normal(keys[-1], (3, 5, 7), dtype=jnp.float32)
    assert jnp.allclose(mse(ya, yb), jnp.mean((ya - yb) ** 2), rtol=1e-5, atol=1e-7)

    print("KERNEL_OK")
</pallas_src>

<mosaic_0001>
module attributes {stable_mosaic.version = 11 : i64} {
  func.func @_mse_kernel(%arg0: i32, %arg1: i32, %arg2: memref<4x512xf32, #tpu.memory_space<vmem>>, %arg3: memref<4x512xf32, #tpu.memory_space<vmem>>, %arg4: memref<1x8x128xf32, #tpu.memory_space<vmem>>, %arg5: memref<4x512xf32, #tpu.memory_space<vmem>>) attributes {dimension_semantics = [#tpu.dimension_semantics<parallel>, #tpu.dimension_semantics<arbitrary>], iteration_bounds = array<i64: 1, 1>, scalar_prefetch = 0 : i64, scratch_operands = 1 : i64, tpu.core_type = #tpu.core_type<tc>, window_params = [{transform_indices = @transform_0, window_bounds = array<i64: 4, 512>}, {transform_indices = @transform_1, window_bounds = array<i64: 4, 512>}, {transform_indices = @transform_2, window_bounds = array<i64: 1, 8, 128>}]} {
    %c0_i32 = arith.constant 0 : i32
    %0 = arith.cmpi eq, %arg1, %c0_i32 : i32
    %1 = arith.extui %0 : i1 to i32
    %c0_i32_0 = arith.constant 0 : i32
    %2 = arith.cmpi ne, %1, %c0_i32_0 : i32
    scf.if %2 {
      %cst = arith.constant 0.000000e+00 : f32
      %13 = vector.broadcast %cst : f32 to vector<4x512xf32>
      %c0_10 = arith.constant 0 : index
      %c0_11 = arith.constant 0 : index
      %14 = vector.load %arg5[%c0_10, %c0_11] : memref<4x512xf32, #tpu.memory_space<vmem>>, vector<4x512xf32>
      tpu.vector_store %arg5[%c0_10, %c0_11], %13 {strides = array<i32>} : memref<4x512xf32, #tpu.memory_space<vmem>>, vector<4x512xf32>,
    } else {
    }
    %c0 = arith.constant 0 : index
    %c0_1 = arith.constant 0 : index
    %3 = vector.load %arg2[%c0, %c0_1] : memref<4x512xf32, #tpu.memory_space<vmem>>, vector<4x512xf32>
    %c0_2 = arith.constant 0 : index
    %c0_3 = arith.constant 0 : index
    %4 = vector.load %arg3[%c0_2, %c0_3] : memref<4x512xf32, #tpu.memory_space<vmem>>, vector<4x512xf32>
    %5 = arith.subf %3, %4 : vector<4x512xf32>
    %c0_4 = arith.constant 0 : index
    %c0_5 = arith.constant 0 : index
    %6 = vector.load %arg5[%c0_4, %c0_5] : memref<4x512xf32, #tpu.memory_space<vmem>>, vector<4x512xf32>
    %7 = arith.mulf %5, %5 : vector<4x512xf32>
    %8 = arith.addf %6, %7 : vector<4x512xf32>
    %c0_6 = arith.constant 0 : index
    %c0_7 = arith.constant 0 : index
    %9 = vector.load %arg5[%c0_6, %c0_7] : memref<4x512xf32, #tpu.memory_space<vmem>>, vector<4x512xf32>
    tpu.vector_store %arg5[%c0_6, %c0_7], %8 {strides = array<i32>} : memref<4x512xf32, #tpu.memory_space<vmem>>, vector<4x512xf32>,
    %c0_i32_8 = arith.constant 0 : i32
    %10 = arith.cmpi eq, %arg1, %c0_i32_8 : i32
    %11 = arith.extui %10 : i1 to i32
    %c0_i32_9 = arith.constant 0 : i32
    %12 = arith.cmpi ne, %11, %c0_i32_9 : i32
    scf.if %12 {
      %c0_10 = arith.constant 0 : index
      %c0_11 = arith.constant 0 : index
      %13 = vector.load %arg5[%c0_10, %c0_11] : memref<4x512xf32, #tpu.memory_space<vmem>>, vector<4x512xf32>
      %14 = vector.shape_cast %13 : vector<4x512xf32> to vector<1x4x512xf32>
      %cst = arith.constant dense<0.000000e+00> : vector<1xf32>
      %15 = vector.multi_reduction <add>, %14, %cst [1, 2] : vector<1x4x512xf32> to vector<1xf32>
      %16 = vector.shape_cast %15 : vector<1xf32> to vector<1x1x1xf32>
      %17 = vector.extract %16[0, 0, 0] : f32 from vector<1x1x1xf32>
      %18 = vector.broadcast %17 : f32 to vector<1x8x128xf32>
      %c0_12 = arith.constant 0 : index
      %c0_13 = arith.constant 0 : index
      %c0_14 = arith.constant 0 : index
      %19 = vector.load %arg4[%c0_12, %c0_13, %c0_14] : memref<1x8x128xf32, #tpu.memory_space<vmem>>, vector<1x8x128xf32>
      tpu.vector_store %arg4[%c0_12, %c0_13, %c0_14], %18 {strides = array<i32>} : memref<1x8x128xf32, #tpu.memory_space<vmem>>, vector<1x8x128xf32>,
    } else {
    }
    return
  }
  func.func @transform_0(%arg0: i32, %arg1: i32) -> (i32, i32) {
    %c1_i32 = arith.constant 1 : i32
    %0 = arith.muli %arg0, %c1_i32 : i32
    %1 = arith.addi %0, %arg1 : i32
    %c0_i32 = arith.constant 0 : i32
    %2 = arith.minsi %1, %c0_i32 : i32
    %c0_i32_0 = arith.constant 0 : i32
    %c0_i32_1 = arith.constant 0 : i32
    return %2, %c0_i32_0 : i32, i32
  }
  func.func @transform_1(%arg0: i32, %arg1: i32) -> (i32, i32) {
    %c1_i32 = arith.constant 1 : i32
    %0 = arith.muli %arg0, %c1_i32 : i32
    %1 = arith.addi %0, %arg1 : i32
    %c0_i32 = arith.constant 0 : i32
    %2 = arith.minsi %1, %c0_i32 : i32
    %c0_i32_0 = arith.constant 0 : i32
    %c0_i32_1 = arith.constant 0 : i32
    return %2, %c0_i32_0 : i32, i32
  }
  func.func @transform_2(%arg0: i32, %arg1: i32) -> (i32, i32, i32) {
    %c0_i32 = arith.constant 0 : i32
    %c0_i32_0 = arith.constant 0 : i32
    %c0_i32_1 = arith.constant 0 : i32
    return %arg0, %c0_i32, %c0_i32_0 : i32, i32, i32
  }
}

</mosaic_0001>

<bundles_post_ra>
// kernel: tpu_custom_call.1
= control target key start
LH: loop header
LB: loop body
LE: loop exit
PB: predicated region body
PF: predicated region fallthrough
CT: control target
= control target key end

     0   :  { %7 = vsyncpa [#allocation4], 0  ;;  %s255_s0 = inlined_call_operand.hbm [shape: f32[4,512], index: 0, kind: input, shape index: {}]   ;;  %s256_s1 = inlined_call_operand.hbm [shape: f32[4,512], index: 1, kind: input, shape index: {}]   ;;  %s257_s2 = inlined_call_operand.hbm [shape: f32[1,8,128], index: 2, kind: output, shape index: {}]  }
   0x1   :  { %8 = vsyncpa [#allocation7], 0 }
   0x2   :  { %9 = vsyncpa [#allocation5], 0  ;;  %s201_s9 = smov [#allocation3]   ;;  %s202_s11 = smov [#allocation6]  }
   0x3   :  { %s22_s10 = sshll.u32 %s201_s9, 4  ;;  %s38_s12 = sshll.u32 %s202_s11, 4  ;;  %s23_s10 = int_to_ptr.vmem [resolvable:$true] %s22_s10  ;;  %s39_s12 = int_to_ptr.vmem [resolvable:$true] %s38_s12 }
   0x4   :  { %s129_s15 = scalar_lea.hbm %s255_s0, 256 }
   0x5   :  { %p130_p0 = scmp.ne.s32.totalorder %s255_s0, %s129_s15  ;;  %p133_p1 = scmp.lt.u32.totalorder %s129_s15, %s255_s0 }
   0x7   :  { %p135_p2 = pnand %p133_p1, %p130_p0 }
   0x9   :  { %138 = shalt.err (!%p135_p2)
}
   0xa   :  { %s139_s20 = scalar_lea.vmem %s23_s10, 256  ;;  %p144_p4 = scmp.lt.s32.totalorder %s23_s10, %s23_s10 }
   0xb   :  { %p140_p3 = scmp.ne.s32.totalorder %s23_s10, %s139_s20  ;;  %p145_p5 = scmp.lt.s32.totalorder %s139_s20, %s139_s20 }
   0xd   :  { %p146_p6 = por %p145_p5, %p144_p4 }
   0xf   :  { %p147_p7 = pnand %p146_p6, %p140_p3 }
  0x11   :  { %150 = shalt.err (!%p147_p7)
}
  0x12   :  { %25 = dma.hbm_to_vmem [thread:$0]  %s255_s0, 256, %s23_s10, [#allocation4]  }
  0x13   :  { %s151_s25 = scalar_lea.hbm %s256_s1, 256 }
  0x14   :  { %p152_p8 = scmp.ne.s32.totalorder %s256_s1, %s151_s25  ;;  %p155_p9 = scmp.lt.u32.totalorder %s151_s25, %s256_s1 }
  0x16   :  { %p157_p10 = pnand %p155_p9, %p152_p8 }
  0x18   :  { %160 = shalt.err (!%p157_p10)
}
  0x19   :  { %s161_s30 = scalar_lea.vmem %s39_s12, 256  ;;  %p166_p12 = scmp.lt.s32.totalorder %s39_s12, %s39_s12 }
  0x1a   :  { %p162_p11 = scmp.ne.s32.totalorder %s39_s12, %s161_s30  ;;  %p167_p13 = scmp.lt.s32.totalorder %s161_s30, %s161_s30 }
  0x1c   :  { %p168_p0 = por %p167_p13, %p166_p12 }
  0x1e   :  { %p169_p1 = pnand %p168_p0, %p162_p11 }
  0x20   :  { %172 = shalt.err (!%p169_p1)
}
  0x21   :  { %41 = dma.hbm_to_vmem [thread:$0]  %s256_s1, 256, %s39_s12, [#allocation7]  }
  0x22   :  { %195 = dma.done.wait [#allocation4], 256  }
  0x23   :  { %196 = vsyncadd [#allocation4], 4294967040 }
  0x24   :  { %197 = dma.done.wait [#allocation7], 256  }
  0x25   :  { %198 = vsyncadd [#allocation7], 4294967040  ;;  %v60_v0 = vld [vmem:[#allocation3] sm:$0xff]  ;;  %v61_v1 = vld [vmem:[#allocation3 + $0x8] sm:$0xff]  ;;  %vm85_vm0 = vcmask 1043456   ;;  %s203_s1 = smov [#allocation8]  }
  0x26   :  { %v62_v2 = vld [vmem:[#allocation6] sm:$0xff]  ;;  %v63_v3 = vld [vmem:[#allocation6 + $0x8] sm:$0xff]  ;;  %s110_s4 = sshll.u32 %s203_s1, 4  ;;  %s111_s4 = int_to_ptr.vmem [resolvable:$true] %s110_s4 }
  0x27   :  { %v64_v4 = vsub.f32 %v60_v0, %v62_v2  ;;  %v65_v5 = vsub.f32 %v61_v1, %v63_v3  ;;  %s173_s6 = scalar_lea.vmem %s111_s4, 128  ;;  %p178_p3 = scmp.lt.s32.totalorder %s111_s4, %s111_s4 }
  0x28   :  { %p174_p2 = scmp.ne.s32.totalorder %s111_s4, %s173_s6  ;;  %p179_p4 = scmp.lt.s32.totalorder %s173_s6, %s173_s6 }
  0x29   :  { %v68_v6 = vmul.f32 %v64_v4, %v64_v4  ;;  %v69_v7 = vmul.f32 %v65_v5, %v65_v5 }
  0x2a   :  { %p180_p5 = por %p179_p4, %p178_p3 }
  0x2b   :  { %v81_v8 = vcombine.high %v68_v6, %v68_v6  ;;  %v86_v9 = vsel %vm85_vm0, %v68_v6, 0.0  ;;  %v82_v10 = vcombine.high %v69_v7, %v69_v7  ;;  %v89_v12 = vsel %vm85_vm0, %v69_v7, 0.0 }
  0x2c   :  { %p181_p6 = pnand %p180_p5, %p174_p2 }
  0x2d   :  { %v87_v11 = vsel %vm85_vm0, %v81_v8, 0.0  ;;  %v91_v14 = vsel %vm85_vm0, %v82_v10, 0.0 }
  0x2e   :  { %v88_v13 = vadd.f32 %v87_v11, %v86_v9 }
  0x30   :  { %v90_v15 = vadd.f32 %v89_v12, %v88_v13 }
  0x32   :  { %v92_v16 = vadd.f32 %v91_v14, %v90_v15 }
  0x34   :  { %93 = vadd.xlane.f32.xlu0 %v92_v16 }
  0xc1   :  { %v94_v17 = vpop.xlane.xlu0 %93 }
  0xc2   :  { %v95_v18 = vrot.slane %v94_v17, 4 }
  0xc4   :  { %v96_v19 = vadd.f32 %v95_v18, %v94_v17 }
  0xc6   :  { %v97_v20 = vrot.slane %v96_v19, 2 }
  0xc8   :  { %v98_v21 = vadd.f32 %v97_v20, %v96_v19 }
  0xca   :  { %v99_v22 = vrot.slane %v98_v21, 1 }
  0xcc   :  { %v100_v23 = vadd.f32 %v99_v22, %v98_v21 }
  0xce   :  { %124 = vpush %v100_v23 }
  0xff   :  { %s125_s5 = spop %124 }
 0x100   :  { %v102_v24 = vstv %s125_s5 }
 0x101   :  { %103 = vst [vmem:[#allocation8] sm:$0xff] %v102_v24 }
 0x102   :  { %184 = shalt.err (!%p181_p6)
}
 0x103   :  { %s185_s9 = scalar_lea.hbm %s257_s2, 128 }
 0x104   :  { %p186_p7 = scmp.ne.s32.totalorder %s257_s2, %s185_s9  ;;  %p189_p8 = scmp.lt.u32.totalorder %s185_s9, %s257_s2 }
 0x106   :  { %p191_p9 = pnand %p189_p8, %p186_p7 }
 0x108   :  { %194 = shalt.err (!%p191_p9)
}
 0x109   :  { %113 = dma.vmem_to_hbm [thread:$0]  %s111_s4, 128, %s257_s2, [#allocation5]  }
 0x10a   :  { %199 = dma.done.wait [#allocation5], 128  }
 0x10b   :  { %200 = vsyncadd [#allocation5], 4294967168 }
 0x10c   :  { %117 = vsyncpa [#allocation4], 1 }
 0x10d   :  { %118 = vsyncpa [#allocation7], 1 }
 0x10e   :  { %119 = vsyncpa [#allocation5], 1 }

</bundles_post_ra>
